<compile_context>
chip_gen: v7x
topology: tpu7x:2x2x1
jax: 0.10.0
libtpu: 0.0.40
codegen_flags: <defaults>
</compile_context>

<pallas_src>
from functools import partial

import numpy as np
import jax
import jax.numpy as jnp
from jax.experimental import pallas as pl
from jax.experimental.pallas import tpu as pltpu

BITS = 4                      # module arg `bits`
COMPRESS_BITS = 32            # compression_dtype = torch.int32
N_PACK = COMPRESS_BITS // BITS


# --------------------------------------------------------------------------------------
# Kernel
# --------------------------------------------------------------------------------------
def _woq_linear_kernel(x_ref, pw_ref, scale_ref, *rest, groupsize, groups_per_tile,
                       fold_scale, has_bias, scale_blocked):
    """One (m, n, k) tile of y = x @ dequant(W) + b with per-group scaling.

    x_ref:     (tm, tk)       bf16  activations (pre-cast in wrapper, natural col order)
    pw_ref:    (tk//8, tn)    int32 kernel-layout packed weights (see repack_for_kernel)
    scale_ref: (gpt, tn) or (G, tn) f32  per-group scale (group, out) layout
    bias_ref:  (1, tn)        f32   (only when has_bias)
    o_ref:     (tm, tn)       f32
    acc_ref:   (tm, tn)       f32   K-reduction accumulator (scratch)
    """
    if has_bias:
        bias_ref, o_ref, acc_ref = rest
    else:
        o_ref, acc_ref = rest
        bias_ref = None

    k_idx = pl.program_id(2)

    @pl.when(k_idx == 0)
    def _init():
        acc_ref[...] = jnp.zeros_like(acc_ref)

    gs8 = groupsize // N_PACK
    xb = x_ref[...]                                   # bf16, cast once in the wrapper

    def group_scale(g):
        if scale_blocked:
            return scale_ref[g:g + 1, :]              # static (1, tn) view — zero cost
        return scale_ref[pl.ds(k_idx * groups_per_tile + g, 1), :]

    def dequant_group(g, scale_row=None):
        pw_g = pw_ref[g * gs8:(g + 1) * gs8, :]       # (gs8, tn) int32, static slice
        blocks = []
        for e in range(N_PACK):                       # static, fully unrolled
            # Sign-extended int4, identical bit math to WeightOnlyLinear.recover():
            # left shift then arithmetic right shift -> value in [-8, 7].
            q = (pw_g << (COMPRESS_BITS - BITS * (e + 1))) >> (COMPRESS_BITS - BITS)
            if scale_row is None:
                blocks.append(q.astype(jnp.bfloat16))           # single direct cast
            else:                                               # fold scale (prefill)
                blocks.append((q.astype(jnp.float32) * scale_row).astype(jnp.bfloat16))
        # Stays a value (vregs) — no VMEM scratch store/reload round-trip.
        return jnp.concatenate(blocks, axis=0)        # (groupsize, tn) bf16

    if fold_scale:
        # Prefill path: scale folded into weights, one block_k-deep MXU pass per k-step.
        w = jnp.concatenate(
            [dequant_group(g, group_scale(g)) for g in range(groups_per_tile)], axis=0)
        acc_ref[...] += jnp.dot(xb, w, preferred_element_type=jnp.float32)
    else:
        # Decode path: per-group dot, scale applied on the small (tm, tn) partial.
        for g in range(groups_per_tile):
            w_g = dequant_group(g)
            part = jnp.dot(xb[:, g * groupsize:(g + 1) * groupsize], w_g,
                           preferred_element_type=jnp.float32)
            acc_ref[...] += part * group_scale(g)

    @pl.when(k_idx == pl.num_programs(2) - 1)
    def _finalize():
        out = acc_ref[...]
        if has_bias:
            out = out + bias_ref[...]
        o_ref[...] = out


# --------------------------------------------------------------------------------------
# Forward wrapper
# --------------------------------------------------------------------------------------
def weight_only_linear(x, packed_kernel, scale_t, bias=None, *, groupsize,
                       block_m=None, block_n=None, block_k=None, fold_scale=None):
    """y = F.linear(x, recover(W), b) with weights in the kernel-friendly packed layout.

    x:             (M, K)      f32 (cast to bf16 here)
    packed_kernel: (K//8, N)   int32  (from repack_for_kernel / pack-time relayout)
    scale_t:       (K//gs, N)  f32    (scale.T)
    bias:          (N,)        f32 or None
    """
    M, K = x.shape
    K8, N = packed_kernel.shape
    assert K8 * N_PACK == K, "packed weight / activation size mismatch"
    assert groupsize % 128 == 0 and K % groupsize == 0, \
        "kernel path requires groupsize % 128 == 0 and in_features % groupsize == 0"
    G = K // groupsize
    assert scale_t.shape == (G, N)
    assert N % 128 == 0, "out_features must be a multiple of 128"

    # ---- tile selection (big tiles; budget re-derived for v7x's 64 MiB VMEM) ----------
    if block_k is None:
        block_k = groupsize
        while block_k * 2 <= min(K, 2048) and K % (block_k * 2) == 0:
            block_k *= 2
    assert block_k % groupsize == 0 and K % block_k == 0
    groups_per_tile = block_k // groupsize

    if block_n is None:
        block_n = 128
        while block_n * 2 <= min(N, 512) and N % (block_n * 2) == 0:
            block_n *= 2
        # Keep >= 2 N-tiles when possible so the "parallel" axis spans both v7x cores.
        if N // block_n == 1 and block_n >= 256:
            block_n //= 2
    assert block_n % 128 == 0 and N % block_n == 0

    if block_m is None:
        if M <= 512:
            block_m = M
        elif M % 256 == 0:
            block_m = 256
        elif M % 128 == 0:
            block_m = 128
        else:
            block_m = M   # TODO(synk): ragged very-large-M tiling not handled
    assert M % block_m == 0

    if fold_scale is None:
        fold_scale = block_m >= 128        # prefill: matmul-dominated, fold scale

    has_bias = bias is not None
    # Per-k scale blocking only when the block satisfies the sublane (8) rule.
    scale_blocked = (groups_per_tile == G) or (groups_per_tile % 8 == 0)

    x_bf16 = x.astype(jnp.bfloat16)        # cast once; halves x DMA bytes

    in_specs = [
        pl.BlockSpec((block_m, block_k), lambda m, n, k: (m, k)),              # x
        pl.BlockSpec((block_k // N_PACK, block_n), lambda m, n, k: (k, n)),    # packed W
    ]
    if scale_blocked:
        in_specs.append(pl.BlockSpec((groups_per_tile, block_n), lambda m, n, k: (k, n)))
    else:
        in_specs.append(pl.BlockSpec((G, block_n), lambda m, n, k: (0, n)))
    args = [x_bf16, packed_kernel, scale_t]
    if has_bias:
        bias2d = jnp.asarray(bias, jnp.float32).reshape(1, N)
        in_specs.append(pl.BlockSpec((1, block_n), lambda m, n, k: (0, n)))
        args.append(bias2d)

    kernel = partial(_woq_linear_kernel, groupsize=groupsize,
                     groups_per_tile=groups_per_tile, fold_scale=fold_scale,
                     has_bias=has_bias, scale_blocked=scale_blocked)

    grid_spec = pltpu.PrefetchScalarGridSpec(
        num_scalar_prefetch=0,
        grid=(M // block_m, N // block_n, K // block_k),
        in_specs=in_specs,
        out_specs=pl.BlockSpec((block_m, block_n), lambda m, n, k: (m, n)),
        scratch_shapes=[pltpu.VMEM((block_m, block_n), jnp.float32)],   # K accumulator
    )

    return pl.pallas_call(
        kernel,
        out_shape=jax.ShapeDtypeStruct((M, N), jnp.float32),
        grid_spec=grid_spec,
        compiler_params=pltpu.CompilerParams(
            dimension_semantics=("parallel", "parallel", "arbitrary"),
            vmem_limit_bytes=48 * 1024 * 1024,      # below v7x's 64 MiB physical VMEM
        ),
    )(*args)


# --------------------------------------------------------------------------------------
# Offline packing (done once at WeightOnlyLinear.pack() / checkpoint-load time)
# --------------------------------------------------------------------------------------
def pack_int_weight_module(int_weight):
    """Replicates WeightOnlyLinear.pack() for compression_dim=1, int32, 4-bit.

    int_weight: (N, K) signed int4 values in int32. Returns (N, K//8) int32,
    nibble e of word j = int_weight[:, j*8 + e] & 0xF.
    """
    q = np.asarray(int_weight).astype(np.int64) & 0xF
    N, K = q.shape
    Kp = K // N_PACK
    q = q.reshape(N, Kp, N_PACK)
    shifts = (np.arange(N_PACK, dtype=np.int64) * BITS).reshape(1, 1, N_PACK)
    words = (q << shifts).sum(axis=2).astype(np.uint32)     # OR == sum (disjoint nibbles)
    return jnp.asarray(words.view(np.int32))


def repack_for_kernel(packed_module, groupsize):
    """Offline relayout of the module's packed buffer into the kernel-friendly layout.

    Module layout: (N, K//8) int32, nibble e of word j holds original column k = j*8+e.
    Kernel layout: (K//8, N) int32, word row g*gs8 + kw (gs8 = groupsize//8) holds, in
    nibble e, original column k = g*groupsize + e*gs8 + kw.  With this layout each nibble
    position unpacks into a CONTIGUOUS block of `gs8` consecutive weight rows, so the
    kernel needs no column permutation of x or scale and no strided scatter.
    """
    pw = np.asarray(packed_module).view(np.uint32)          # (N, K//8)
    N, Kp = pw.shape
    K = Kp * N_PACK
    assert groupsize % N_PACK == 0 and K % groupsize == 0
    gs8 = groupsize // N_PACK
    G = K // groupsize

    shifts = np.arange(N_PACK, dtype=np.uint32) * BITS
    nib = (pw[:, :, None] >> shifts) & np.uint32(0xF)       # (N, K//8, 8) unsigned nibbles
    q = nib.reshape(N, K)                                   # natural k order (k = j*8+e)

    q = q.reshape(N, G, N_PACK, gs8)                        # [n, g, e, kw]; r = e*gs8+kw
    shifts2 = (np.arange(N_PACK, dtype=np.uint64) * BITS).reshape(1, 1, N_PACK, 1)
    words = (q.astype(np.uint64) << shifts2).sum(axis=2)    # (N, G, gs8)
    words = words.transpose(1, 2, 0).reshape(G * gs8, N).astype(np.uint32)  # (K//8, N)
    return jnp.asarray(words.view(np.int32))


# --------------------------------------------------------------------------------------
# Pure reference of recover() + F.linear()
# --------------------------------------------------------------------------------------
def reference_forward(x, int_weight, scale, bias, groupsize):
    K = x.shape[1]
    col = np.arange(K)
    g = np.minimum(col // groupsize, scale.shape[1] - 1)
    wf = int_weight.astype(np.float64) * scale[:, g].astype(np.float64)
    y = x.astype(np.float64) @ wf.T
    if bias is not None:
        y = y + bias.astype(np.float64)[None, :]
    return y.astype(np.float32)


if __name__ == "__main__":
    in_features, out_features, groupsize = 512, 256, 128
    batch_decode, batch_prefill = 8, 256

    key = jax.random.PRNGKey(0)
    kw_, ks_, kb_, kx_, kp_ = jax.random.split(key, 5)
    int_weight = jax.random.randint(
        kw_, (out_features, in_features), -(2 ** (BITS - 1)), 2 ** (BITS - 1),
        dtype=jnp.int32)
    n_groups = in_features // groupsize
    scale = (jax.random.uniform(ks_, (out_features, n_groups), dtype=jnp.float32)
             * 0.05 + 0.01)
    bias = jax.random.normal(kb_, (out_features,), dtype=jnp.float32)
    x_dec = jax.random.normal(kx_, (batch_decode, in_features), dtype=jnp.float32)
    x_pre = jax.random.normal(kp_, (batch_prefill, in_features), dtype=jnp.float32)

    # ---- offline (pack time): module-format packing, then TPU-friendly relayout ----
    packed_module = pack_int_weight_module(int_weight)            # spec's buffer layout
    packed_kernel = repack_for_kernel(packed_module, groupsize)   # kernel layout (K//8, N)
    scale_t = jnp.asarray(np.asarray(scale).T)                    # (G, N)

    # ---- decode path (small M: per-group dots, output-side scaling) ----
    out_dec = weight_only_linear(x_dec, packed_kernel, scale_t, bias,
                                 groupsize=groupsize)
    out_dec = jax.block_until_ready(out_dec)
    ref_dec = reference_forward(np.asarray(x_dec), np.asarray(int_weight),
                                np.asarray(scale), np.asarray(bias), groupsize)
    assert out_dec.shape == (batch_decode, out_features)
    err_dec = np.max(np.abs(np.asarray(out_dec) - ref_dec))
    assert np.allclose(np.asarray(out_dec), ref_dec, rtol=2e-2, atol=5e-2), \
        f"decode mismatch vs reference (max abs err {err_dec})"

    # ---- prefill path (large M: scale folded into weights, one block_k-deep dot) ----
    out_pre = weight_only_linear(x_pre, packed_kernel, scale_t, bias,
                                 groupsize=groupsize)
    out_pre = jax.block_until_ready(out_pre)
    ref_pre = reference_forward(np.asarray(x_pre), np.asarray(int_weight),
                                np.asarray(scale), np.asarray(bias), groupsize)
    assert out_pre.shape == (batch_prefill, out_features)
    err_pre = np.max(np.abs(np.asarray(out_pre) - ref_pre))
    # bf16 activations/weights into the MXU with f32 accumulation -> relaxed tolerance.
    assert np.allclose(np.asarray(out_pre), ref_pre, rtol=2e-2, atol=5e-2), \
        f"prefill mismatch vs reference (max abs err {err_pre})"

    print("KERNEL_OK")
</pallas_src>

<mosaic_0001>
module attributes {stable_mosaic.version = 11 : i64} {
  func.func @_woq_linear_kernel(%arg0: i32, %arg1: i32, %arg2: i32, %arg3: memref<8x512xbf16, #tpu.memory_space<vmem>>, %arg4: memref<64x128xi32, #tpu.memory_space<vmem>>, %arg5: memref<4x128xf32, #tpu.memory_space<vmem>>, %arg6: memref<1x128xf32, #tpu.memory_space<vmem>>, %arg7: memref<8x128xf32, #tpu.memory_space<vmem>>, %arg8: memref<8x128xf32, #tpu.memory_space<vmem>>) attributes {dimension_semantics = [#tpu.dimension_semantics<parallel>, #tpu.dimension_semantics<parallel>, #tpu.dimension_semantics<arbitrary>], iteration_bounds = array<i64: 1, 2, 1>, scalar_prefetch = 0 : i64, scratch_operands = 1 : i64, tpu.core_type = #tpu.core_type<tc>, window_params = [{transform_indices = @transform_0, window_bounds = array<i64: 8, 512>}, {transform_indices = @transform_1, window_bounds = array<i64: 64, 128>}, {transform_indices = @transform_2, window_bounds = array<i64: 4, 128>}, {transform_indices = @transform_3, window_bounds = array<i64: 1, 128>}, {transform_indices = @transform_4, window_bounds = array<i64: 8, 128>}]} {
    %c0_i32 = arith.constant 0 : i32
    %0 = arith.cmpi eq, %arg2, %c0_i32 : i32
    %1 = arith.extui %0 : i1 to i32
    %c0_i32_0 = arith.constant 0 : i32
    %2 = arith.cmpi ne, %1, %c0_i32_0 : i32
    scf.if %2 {
      %cst_90 = arith.constant 0.000000e+00 : f32
      %207 = vector.broadcast %cst_90 : f32 to vector<8x128xf32>
      %c0_91 = arith.constant 0 : index
      %c0_92 = arith.constant 0 : index
      %208 = vector.load %arg8[%c0_91, %c0_92] : memref<8x128xf32, #tpu.memory_space<vmem>>, vector<8x128xf32>
      tpu.vector_store %arg8[%c0_91, %c0_92], %207 {strides = array<i32>} : memref<8x128xf32, #tpu.memory_space<vmem>>, vector<8x128xf32>,
    } else {
    }
    %c0 = arith.constant 0 : index
    %c0_1 = arith.constant 0 : index
    %3 = vector.load %arg3[%c0, %c0_1] : memref<8x512xbf16, #tpu.memory_space<vmem>>, vector<8x512xbf16>
    %c0_2 = arith.constant 0 : index
    %c0_3 = arith.constant 0 : index
    %4 = vector.load %arg4[%c0_2, %c0_3] : memref<64x128xi32, #tpu.memory_space<vmem>>, vector<16x128xi32>
    %c28_i32 = arith.constant 28 : i32
    %5 = vector.broadcast %c28_i32 : i32 to vector<16x128xi32>
    %6 = arith.shli %4, %5 : vector<16x128xi32>
    %c28_i32_4 = arith.constant 28 : i32
    %7 = vector.broadcast %c28_i32_4 : i32 to vector<16x128xi32>
    %8 = arith.shrsi %6, %7 : vector<16x128xi32>
    %9 = arith.sitofp %8 : vector<16x128xi32> to vector<16x128xbf16>
    %c24_i32 = arith.constant 24 : i32
    %10 = vector.broadcast %c24_i32 : i32 to vector<16x128xi32>
    %11 = arith.shli %4, %10 : vector<16x128xi32>
    %c28_i32_5 = arith.constant 28 : i32
    %12 = vector.broadcast %c28_i32_5 : i32 to vector<16x128xi32>
    %13 = arith.shrsi %11, %12 : vector<16x128xi32>
    %14 = arith.sitofp %13 : vector<16x128xi32> to vector<16x128xbf16>
    %c20_i32 = arith.constant 20 : i32
    %15 = vector.broadcast %c20_i32 : i32 to vector<16x128xi32>
    %16 = arith.shli %4, %15 : vector<16x128xi32>
    %c28_i32_6 = arith.constant 28 : i32
    %17 = vector.broadcast %c28_i32_6 : i32 to vector<16x128xi32>
    %18 = arith.shrsi %16, %17 : vector<16x128xi32>
    %19 = arith.sitofp %18 : vector<16x128xi32> to vector<16x128xbf16>
    %c16_i32 = arith.constant 16 : i32
    %20 = vector.broadcast %c16_i32 : i32 to vector<16x128xi32>
    %21 = arith.shli %4, %20 : vector<16x128xi32>
    %c28_i32_7 = arith.constant 28 : i32
    %22 = vector.broadcast %c28_i32_7 : i32 to vector<16x128xi32>
    %23 = arith.shrsi %21, %22 : vector<16x128xi32>
    %24 = arith.sitofp %23 : vector<16x128xi32> to vector<16x128xbf16>
    %c12_i32 = arith.constant 12 : i32
    %25 = vector.broadcast %c12_i32 : i32 to vector<16x128xi32>
    %26 = arith.shli %4, %25 : vector<16x128xi32>
    %c28_i32_8 = arith.constant 28 : i32
    %27 = vector.broadcast %c28_i32_8 : i32 to vector<16x128xi32>
    %28 = arith.shrsi %26, %27 : vector<16x128xi32>
    %29 = arith.sitofp %28 : vector<16x128xi32> to vector<16x128xbf16>
    %c8_i32 = arith.constant 8 : i32
    %30 = vector.broadcast %c8_i32 : i32 to vector<16x128xi32>
    %31 = arith.shli %4, %30 : vector<16x128xi32>
    %c28_i32_9 = arith.constant 28 : i32
    %32 = vector.broadcast %c28_i32_9 : i32 to vector<16x128xi32>
    %33 = arith.shrsi %31, %32 : vector<16x128xi32>
    %34 = arith.sitofp %33 : vector<16x128xi32> to vector<16x128xbf16>
    %c4_i32 = arith.constant 4 : i32
    %35 = vector.broadcast %c4_i32 : i32 to vector<16x128xi32>
    %36 = arith.shli %4, %35 : vector<16x128xi32>
    %c28_i32_10 = arith.constant 28 : i32
    %37 = vector.broadcast %c28_i32_10 : i32 to vector<16x128xi32>
    %38 = arith.shrsi %36, %37 : vector<16x128xi32>
    %39 = arith.sitofp %38 : vector<16x128xi32> to vector<16x128xbf16>
    %c0_i32_11 = arith.constant 0 : i32
    %40 = vector.broadcast %c0_i32_11 : i32 to vector<16x128xi32>
    %41 = arith.shli %4, %40 : vector<16x128xi32>
    %c28_i32_12 = arith.constant 28 : i32
    %42 = vector.broadcast %c28_i32_12 : i32 to vector<16x128xi32>
    %43 = arith.shrsi %41, %42 : vector<16x128xi32>
    %44 = arith.sitofp %43 : vector<16x128xi32> to vector<16x128xbf16>
    %45 = tpu.concatenate %9, %14, %19, %24, %29, %34, %39, %44 in 0 : vector<16x128xbf16>, vector<16x128xbf16>, vector<16x128xbf16>, vector<16x128xbf16>, vector<16x128xbf16>, vector<16x128xbf16>, vector<16x128xbf16>, vector<16x128xbf16> -> vector<128x128xbf16>
    %46 = vector.extract_strided_slice %3 {offsets = [0, 0], sizes = [8, 128], strides = [1, 1]} : vector<8x512xbf16> to vector<8x128xbf16>
    %cst = arith.constant dense<0.000000e+00> : vector<8x128xf32>
    %47 = tpu.matmul %46, %45, %cst {dimension_numbers = #tpu.dot_dimension_numbers<[1], [0], [0], [1], [0, 0, 1, 1], [], []>} : vector<8x128xbf16>, vector<128x128xbf16>, vector<8x128xf32> -> vector<8x128xf32>
    %c0_13 = arith.constant 0 : index
    %c0_14 = arith.constant 0 : index
    %48 = vector.load %arg8[%c0_13, %c0_14] : memref<8x128xf32, #tpu.memory_space<vmem>>, vector<8x128xf32>
    %c0_15 = arith.constant 0 : index
    %c0_16 = arith.constant 0 : index
    %49 = vector.load %arg5[%c0_15, %c0_16] : memref<4x128xf32, #tpu.memory_space<vmem>>, vector<1x128xf32>
    %50 = vector.broadcast %49 : vector<1x128xf32> to vector<8x128xf32>
    %51 = arith.mulf %47, %50 : vector<8x128xf32>
    %52 = arith.addf %48, %51 : vector<8x128xf32>
    %c0_17 = arith.constant 0 : index
    %c0_18 = arith.constant 0 : index
    %53 = vector.load %arg8[%c0_17, %c0_18] : memref<8x128xf32, #tpu.memory_space<vmem>>, vector<8x128xf32>
    tpu.vector_store %arg8[%c0_17, %c0_18], %52 {strides = array<i32>} : memref<8x128xf32, #tpu.memory_space<vmem>>, vector<8x128xf32>,
    %c16 = arith.constant 16 : index
    %c0_19 = arith.constant 0 : index
    %54 = vector.load %arg4[%c16, %c0_19] : memref<64x128xi32, #tpu.memory_space<vmem>>, vector<16x128xi32>
    %c28_i32_20 = arith.constant 28 : i32
    %55 = vector.broadcast %c28_i32_20 : i32 to vector<16x128xi32>
    %56 = arith.shli %54, %55 : vector<16x128xi32>
    %c28_i32_21 = arith.constant 28 : i32
    %57 = vector.broadcast %c28_i32_21 : i32 to vector<16x128xi32>
    %58 = arith.shrsi %56, %57 : vector<16x128xi32>
    %59 = arith.sitofp %58 : vector<16x128xi32> to vector<16x128xbf16>
    %c24_i32_22 = arith.constant 24 : i32
    %60 = vector.broadcast %c24_i32_22 : i32 to vector<16x128xi32>
    %61 = arith.shli %54, %60 : vector<16x128xi32>
    %c28_i32_23 = arith.constant 28 : i32
    %62 = vector.broadcast %c28_i32_23 : i32 to vector<16x128xi32>
    %63 = arith.shrsi %61, %62 : vector<16x128xi32>
    %64 = arith.sitofp %63 : vector<16x128xi32> to vector<16x128xbf16>
    %c20_i32_24 = arith.constant 20 : i32
    %65 = vector.broadcast %c20_i32_24 : i32 to vector<16x128xi32>
    %66 = arith.shli %54, %65 : vector<16x128xi32>
    %c28_i32_25 = arith.constant 28 : i32
    %67 = vector.broadcast %c28_i32_25 : i32 to vector<16x128xi32>
    %68 = arith.shrsi %66, %67 : vector<16x128xi32>
    %69 = arith.sitofp %68 : vector<16x128xi32> to vector<16x128xbf16>
    %c16_i32_26 = arith.constant 16 : i32
    %70 = vector.broadcast %c16_i32_26 : i32 to vector<16x128xi32>
    %71 = arith.shli %54, %70 : vector<16x128xi32>
    %c28_i32_27 = arith.constant 28 : i32
    %72 = vector.broadcast %c28_i32_27 : i32 to vector<16x128xi32>
    %73 = arith.shrsi %71, %72 : vector<16x128xi32>
    %74 = arith.sitofp %73 : vector<16x128xi32> to vector<16x128xbf16>
    %c12_i32_28 = arith.constant 12 : i32
    %75 = vector.broadcast %c12_i32_28 : i32 to vector<16x128xi32>
    %76 = arith.shli %54, %75 : vector<16x128xi32>
    %c28_i32_29 = arith.constant 28 : i32
    %77 = vector.broadcast %c28_i32_29 : i32 to vector<16x128xi32>
    %78 = arith.shrsi %76, %77 : vector<16x128xi32>
    %79 = arith.sitofp %78 : vector<16x128xi32> to vector<16x128xbf16>
    %c8_i32_30 = arith.constant 8 : i32
    %80 = vector.broadcast %c8_i32_30 : i32 to vector<16x128xi32>
    %81 = arith.shli %54, %80 : vector<16x128xi32>
    %c28_i32_31 = arith.constant 28 : i32
    %82 = vector.broadcast %c28_i32_31 : i32 to vector<16x128xi32>
    %83 = arith.shrsi %81, %82 : vector<16x128xi32>
    %84 = arith.sitofp %83 : vector<16x128xi32> to vector<16x128xbf16>
    %c4_i32_32 = arith.constant 4 : i32
    %85 = vector.broadcast %c4_i32_32 : i32 to vector<16x128xi32>
    %86 = arith.shli %54, %85 : vector<16x128xi32>
    %c28_i32_33 = arith.constant 28 : i32
    %87 = vector.broadcast %c28_i32_33 : i32 to vector<16x128xi32>
    %88 = arith.shrsi %86, %87 : vector<16x128xi32>
    %89 = arith.sitofp %88 : vector<16x128xi32> to vector<16x128xbf16>
    %c0_i32_34 = arith.constant 0 : i32
    %90 = vector.broadcast %c0_i32_34 : i32 to vector<16x128xi32>
    %91 = arith.shli %54, %90 : vector<16x128xi32>
    %c28_i32_35 = arith.constant 28 : i32
    %92 = vector.broadcast %c28_i32_35 : i32 to vector<16x128xi32>
    %93 = arith.shrsi %91, %92 : vector<16x128xi32>
    %94 = arith.sitofp %93 : vector<16x128xi32> to vector<16x128xbf16>
    %95 = tpu.concatenate %59, %64, %69, %74, %79, %84, %89, %94 in 0 : vector<16x128xbf16>, vector<16x128xbf16>, vector<16x128xbf16>, vector<16x128xbf16>, vector<16x128xbf16>, vector<16x128xbf16>, vector<16x128xbf16>, vector<16x128xbf16> -> vector<128x128xbf16>
    %96 = vector.extract_strided_slice %3 {offsets = [0, 128], sizes = [8, 128], strides = [1, 1]} : vector<8x512xbf16> to vector<8x128xbf16>
    %cst_36 = arith.constant dense<0.000000e+00> : vector<8x128xf32>
    %97 = tpu.matmul %96, %95, %cst_36 {dimension_numbers = #tpu.dot_dimension_numbers<[1], [0], [0], [1], [0, 0, 1, 1], [], []>} : vector<8x128xbf16>, vector<128x128xbf16>, vector<8x128xf32> -> vector<8x128xf32>
    %c0_37 = arith.constant 0 : index
    %c0_38 = arith.constant 0 : index
    %98 = vector.load %arg8[%c0_37, %c0_38] : memref<8x128xf32, #tpu.memory_space<vmem>>, vector<8x128xf32>
    %c1 = arith.constant 1 : index
    %c0_39 = arith.constant 0 : index
    %99 = vector.load %arg5[%c1, %c0_39] : memref<4x128xf32, #tpu.memory_space<vmem>>, vector<1x128xf32>
    %100 = vector.broadcast %99 : vector<1x128xf32> to vector<8x128xf32>
    %101 = arith.mulf %97, %100 : vector<8x128xf32>
    %102 = arith.addf %98, %101 : vector<8x128xf32>
    %c0_40 = arith.constant 0 : index
    %c0_41 = arith.constant 0 : index
    %103 = vector.load %arg8[%c0_40, %c0_41] : memref<8x128xf32, #tpu.memory_space<vmem>>, vector<8x128xf32>
    tpu.vector_store %arg8[%c0_40, %c0_41], %102 {strides = array<i32>} : memref<8x128xf32, #tpu.memory_space<vmem>>, vector<8x128xf32>,
    %c32 = arith.constant 32 : index
    %c0_42 = arith.constant 0 : index
    %104 = vector.load %arg4[%c32, %c0_42] : memref<64x128xi32, #tpu.memory_space<vmem>>, vector<16x128xi32>
    %c28_i32_43 = arith.constant 28 : i32
    %105 = vector.broadcast %c28_i32_43 : i32 to vector<16x128xi32>
    %106 = arith.shli %104, %105 : vector<16x128xi32>
    %c28_i32_44 = arith.constant 28 : i32
    %107 = vector.broadcast %c28_i32_44 : i32 to vector<16x128xi32>
    %108 = arith.shrsi %106, %107 : vector<16x128xi32>
    %109 = arith.sitofp %108 : vector<16x128xi32> to vector<16x128xbf16>
    %c24_i32_45 = arith.constant 24 : i32
    %110 = vector.broadcast %c24_i32_45 : i32 to vector<16x128xi32>
    %111 = arith.shli %104, %110 : vector<16x128xi32>
    %c28_i32_46 = arith.constant 28 : i32
    %112 = vector.broadcast %c28_i32_46 : i32 to vector<16x128xi32>
    %113 = arith.shrsi %111, %112 : vector<16x128xi32>
    %114 = arith.sitofp %113 : vector<16x128xi32> to vector<16x128xbf16>
    %c20_i32_47 = arith.constant 20 : i32
    %115 = vector.broadcast %c20_i32_47 : i32 to vector<16x128xi32>
    %116 = arith.shli %104, %115 : vector<16x128xi32>
    %c28_i32_48 = arith.constant 28 : i32
    %117 = vector.broadcast %c28_i32_48 : i32 to vector<16x128xi32>
    %118 = arith.shrsi %116, %117 : vector<16x128xi32>
    %119 = arith.sitofp %118 : vector<16x128xi32> to vector<16x128xbf16>
    %c16_i32_49 = arith.constant 16 : i32
    %120 = vector.broadcast %c16_i32_49 : i32 to vector<16x128xi32>
    %121 = arith.shli %104, %120 : vector<16x128xi32>
    %c28_i32_50 = arith.constant 28 : i32
    %122 = vector.broadcast %c28_i32_50 : i32 to vector<16x128xi32>
    %123 = arith.shrsi %121, %122 : vector<16x128xi32>
    %124 = arith.sitofp %123 : vector<16x128xi32> to vector<16x128xbf16>
    %c12_i32_51 = arith.constant 12 : i32
    %125 = vector.broadcast %c12_i32_51 : i32 to vector<16x128xi32>
    %126 = arith.shli %104, %125 : vector<16x128xi32>
    %c28_i32_52 = arith.constant 28 : i32
    %127 = vector.broadcast %c28_i32_52 : i32 to vector<16x128xi32>
    %128 = arith.shrsi %126, %127 : vector<16x128xi32>
    %129 = arith.sitofp %128 : vector<16x128xi32> to vector<16x128xbf16>
    %c8_i32_53 = arith.constant 8 : i32
    %130 = vector.broadcast %c8_i32_53 : i32 to vector<16x128xi32>
    %131 = arith.shli %104, %130 : vector<16x128xi32>
    %c28_i32_54 = arith.constant 28 : i32
    %132 = vector.broadcast %c28_i32_54 : i32 to vector<16x128xi32>
    %133 = arith.shrsi %131, %132 : vector<16x128xi32>
    %134 = arith.sitofp %133 : vector<16x128xi32> to vector<16x128xbf16>
    %c4_i32_55 = arith.constant 4 : i32
    %135 = vector.broadcast %c4_i32_55 : i32 to vector<16x128xi32>
    %136 = arith.shli %104, %135 : vector<16x128xi32>
    %c28_i32_56 = arith.constant 28 : i32
    %137 = vector.broadcast %c28_i32_56 : i32 to vector<16x128xi32>
    %138 = arith.shrsi %136, %137 : vector<16x128xi32>
    %139 = arith.sitofp %138 : vector<16x128xi32> to vector<16x128xbf16>
    %c0_i32_57 = arith.constant 0 : i32
    %140 = vector.broadcast %c0_i32_57 : i32 to vector<16x128xi32>
    %141 = arith.shli %104, %140 : vector<16x128xi32>
    %c28_i32_58 = arith.constant 28 : i32
    %142 = vector.broadcast %c28_i32_58 : i32 to vector<16x128xi32>
    %143 = arith.shrsi %141, %142 : vector<16x128xi32>
    %144 = arith.sitofp %143 : vector<16x128xi32> to vector<16x128xbf16>
    %145 = tpu.concatenate %109, %114, %119, %124, %129, %134, %139, %144 in 0 : vector<16x128xbf16>, vector<16x128xbf16>, vector<16x128xbf16>, vector<16x128xbf16>, vector<16x128xbf16>, vector<16x128xbf16>, vector<16x128xbf16>, vector<16x128xbf16> -> vector<128x128xbf16>
    %146 = vector.extract_strided_slice %3 {offsets = [0, 256], sizes = [8, 128], strides = [1, 1]} : vector<8x512xbf16> to vector<8x128xbf16>
    %cst_59 = arith.constant dense<0.000000e+00> : vector<8x128xf32>
    %147 = tpu.matmul %146, %145, %cst_59 {dimension_numbers = #tpu.dot_dimension_numbers<[1], [0], [0], [1], [0, 0, 1, 1], [], []>} : vector<8x128xbf16>, vector<128x128xbf16>, vector<8x128xf32> -> vector<8x128xf32>
    %c0_60 = arith.constant 0 : index
    %c0_61 = arith.constant 0 : index
    %148 = vector.load %arg8[%c0_60, %c0_61] : memref<8x128xf32, #tpu.memory_space<vmem>>, vector<8x128xf32>
    %c2 = arith.constant 2 : index
    %c0_62 = arith.constant 0 : index
    %149 = vector.load %arg5[%c2, %c0_62] : memref<4x128xf32, #tpu.memory_space<vmem>>, vector<1x128xf32>
    %150 = vector.broadcast %149 : vector<1x128xf32> to vector<8x128xf32>
    %151 = arith.mulf %147, %150 : vector<8x128xf32>
    %152 = arith.addf %148, %151 : vector<8x128xf32>
    %c0_63 = arith.constant 0 : index
    %c0_64 = arith.constant 0 : index
    %153 = vector.load %arg8[%c0_63, %c0_64] : memref<8x128xf32, #tpu.memory_space<vmem>>, vector<8x128xf32>
    tpu.vector_store %arg8[%c0_63, %c0_64], %152 {strides = array<i32>} : memref<8x128xf32, #tpu.memory_space<vmem>>, vector<8x128xf32>,
    %c48 = arith.constant 48 : index
    %c0_65 = arith.constant 0 : index
    %154 = vector.load %arg4[%c48, %c0_65] : memref<64x128xi32, #tpu.memory_space<vmem>>, vector<16x128xi32>
    %c28_i32_66 = arith.constant 28 : i32
    %155 = vector.broadcast %c28_i32_66 : i32 to vector<16x128xi32>
    %156 = arith.shli %154, %155 : vector<16x128xi32>
    %c28_i32_67 = arith.constant 28 : i32
    %157 = vector.broadcast %c28_i32_67 : i32 to vector<16x128xi32>
    %158 = arith.shrsi %156, %157 : vector<16x128xi32>
    %159 = arith.sitofp %158 : vector<16x128xi32> to vector<16x128xbf16>
    %c24_i32_68 = arith.constant 24 : i32
    %160 = vector.broadcast %c24_i32_68 : i32 to vector<16x128xi32>
    %161 = arith.shli %154, %160 : vector<16x128xi32>
    %c28_i32_69 = arith.constant 28 : i32
    %162 = vector.broadcast %c28_i32_69 : i32 to vector<16x128xi32>
    %163 = arith.shrsi %161, %162 : vector<16x128xi32>
    %164 = arith.sitofp %163 : vector<16x128xi32> to vector<16x128xbf16>
    %c20_i32_70 = arith.constant 20 : i32
    %165 = vector.broadcast %c20_i32_70 : i32 to vector<16x128xi32>
    %166 = arith.shli %154, %165 : vector<16x128xi32>
    %c28_i32_71 = arith.constant 28 : i32
    %167 = vector.broadcast %c28_i32_71 : i32 to vector<16x128xi32>
    %168 = arith.shrsi %166, %167 : vector<16x128xi32>
    %169 = arith.sitofp %168 : vector<16x128xi32> to vector<16x128xbf16>
    %c16_i32_72 = arith.constant 16 : i32
    %170 = vector.broadcast %c16_i32_72 : i32 to vector<16x128xi32>
    %171 = arith.shli %154, %170 : vector<16x128xi32>
    %c28_i32_73 = arith.constant 28 : i32
    %172 = vector.broadcast %c28_i32_73 : i32 to vector<16x128xi32>
    %173 = arith.shrsi %171, %172 : vector<16x128xi32>
    %174 = arith.sitofp %173 : vector<16x128xi32> to vector<16x128xbf16>
    %c12_i32_74 = arith.constant 12 : i32
    %175 = vector.broadcast %c12_i32_74 : i32 to vector<16x128xi32>
    %176 = arith.shli %154, %175 : vector<16x128xi32>
    %c28_i32_75 = arith.constant 28 : i32
    %177 = vector.broadcast %c28_i32_75 : i32 to vector<16x128xi32>
    %178 = arith.shrsi %176, %177 : vector<16x128xi32>
    %179 = arith.sitofp %178 : vector<16x128xi32> to vector<16x128xbf16>
    %c8_i32_76 = arith.constant 8 : i32
    %180 = vector.broadcast %c8_i32_76 : i32 to vector<16x128xi32>
    %181 = arith.shli %154, %180 : vector<16x128xi32>
    %c28_i32_77 = arith.constant 28 : i32
    %182 = vector.broadcast %c28_i32_77 : i32 to vector<16x128xi32>
    %183 = arith.shrsi %181, %182 : vector<16x128xi32>
    %184 = arith.sitofp %183 : vector<16x128xi32> to vector<16x128xbf16>
    %c4_i32_78 = arith.constant 4 : i32
    %185 = vector.broadcast %c4_i32_78 : i32 to vector<16x128xi32>
    %186 = arith.shli %154, %185 : vector<16x128xi32>
    %c28_i32_79 = arith.constant 28 : i32
    %187 = vector.broadcast %c28_i32_79 : i32 to vector<16x128xi32>
    %188 = arith.shrsi %186, %187 : vector<16x128xi32>
    %189 = arith.sitofp %188 : vector<16x128xi32> to vector<16x128xbf16>
    %c0_i32_80 = arith.constant 0 : i32
    %190 = vector.broadcast %c0_i32_80 : i32 to vector<16x128xi32>
    %191 = arith.shli %154, %190 : vector<16x128xi32>
    %c28_i32_81 = arith.constant 28 : i32
    %192 = vector.broadcast %c28_i32_81 : i32 to vector<16x128xi32>
    %193 = arith.shrsi %191, %192 : vector<16x128xi32>
    %194 = arith.sitofp %193 : vector<16x128xi32> to vector<16x128xbf16>
    %195 = tpu.concatenate %159, %164, %169, %174, %179, %184, %189, %194 in 0 : vector<16x128xbf16>, vector<16x128xbf16>, vector<16x128xbf16>, vector<16x128xbf16>, vector<16x128xbf16>, vector<16x128xbf16>, vector<16x128xbf16>, vector<16x128xbf16> -> vector<128x128xbf16>
    %196 = vector.extract_strided_slice %3 {offsets = [0, 384], sizes = [8, 128], strides = [1, 1]} : vector<8x512xbf16> to vector<8x128xbf16>
    %cst_82 = arith.constant dense<0.000000e+00> : vector<8x128xf32>
    %197 = tpu.matmul %196, %195, %cst_82 {dimension_numbers = #tpu.dot_dimension_numbers<[1], [0], [0], [1], [0, 0, 1, 1], [], []>} : vector<8x128xbf16>, vector<128x128xbf16>, vector<8x128xf32> -> vector<8x128xf32>
    %c0_83 = arith.constant 0 : index
    %c0_84 = arith.constant 0 : index
    %198 = vector.load %arg8[%c0_83, %c0_84] : memref<8x128xf32, #tpu.memory_space<vmem>>, vector<8x128xf32>
    %c3 = arith.constant 3 : index
    %c0_85 = arith.constant 0 : index
    %199 = vector.load %arg5[%c3, %c0_85] : memref<4x128xf32, #tpu.memory_space<vmem>>, vector<1x128xf32>
    %200 = vector.broadcast %199 : vector<1x128xf32> to vector<8x128xf32>
    %201 = arith.mulf %197, %200 : vector<8x128xf32>
    %202 = arith.addf %198, %201 : vector<8x128xf32>
    %c0_86 = arith.constant 0 : index
    %c0_87 = arith.constant 0 : index
    %203 = vector.load %arg8[%c0_86, %c0_87] : memref<8x128xf32, #tpu.memory_space<vmem>>, vector<8x128xf32>
    tpu.vector_store %arg8[%c0_86, %c0_87], %202 {strides = array<i32>} : memref<8x128xf32, #tpu.memory_space<vmem>>, vector<8x128xf32>,
    %c0_i32_88 = arith.constant 0 : i32
    %204 = arith.cmpi eq, %arg2, %c0_i32_88 : i32
    %205 = arith.extui %204 : i1 to i32
    %c0_i32_89 = arith.constant 0 : i32
    %206 = arith.cmpi ne, %205, %c0_i32_89 : i32
    scf.if %206 {
      %c0_90 = arith.constant 0 : index
      %c0_91 = arith.constant 0 : index
      %207 = vector.load %arg8[%c0_90, %c0_91] : memref<8x128xf32, #tpu.memory_space<vmem>>, vector<8x128xf32>
      %c0_92 = arith.constant 0 : index
      %c0_93 = arith.constant 0 : index
      %208 = vector.load %arg6[%c0_92, %c0_93] : memref<1x128xf32, #tpu.memory_space<vmem>>, vector<1x128xf32>
      %209 = vector.broadcast %208 : vector<1x128xf32> to vector<8x128xf32>
      %210 = arith.addf %207, %209 : vector<8x128xf32>
      %c0_94 = arith.constant 0 : index
      %c0_95 = arith.constant 0 : index
      %211 = vector.load %arg7[%c0_94, %c0_95] : memref<8x128xf32, #tpu.memory_space<vmem>>, vector<8x128xf32>
      tpu.vector_store %arg7[%c0_94, %c0_95], %210 {strides = array<i32>} : memref<8x128xf32, #tpu.memory_space<vmem>>, vector<8x128xf32>,
    } else {
    }
    return
  }
  func.func @transform_0(%arg0: i32, %arg1: i32, %arg2: i32) -> (i32, i32) {
    %c0_i32 = arith.constant 0 : i32
    return %arg0, %arg2 : i32, i32
  }
  func.func @transform_1(%arg0: i32, %arg1: i32, %arg2: i32) -> (i32, i32) {
    %c0_i32 = arith.constant 0 : i32
    return %arg2, %arg1 : i32, i32
  }
  func.func @transform_2(%arg0: i32, %arg1: i32, %arg2: i32) -> (i32, i32) {
    %c0_i32 = arith.constant 0 : i32
    return %arg2, %arg1 : i32, i32
  }
  func.func @transform_3(%arg0: i32, %arg1: i32, %arg2: i32) -> (i32, i32) {
    %c0_i32 = arith.constant 0 : i32
    %c0_i32_0 = arith.constant 0 : i32
    return %c0_i32, %arg1 : i32, i32
  }
  func.func @transform_4(%arg0: i32, %arg1: i32, %arg2: i32) -> (i32, i32) {
    %c0_i32 = arith.constant 0 : i32
    return %arg0, %arg1 : i32, i32
  }
}

</mosaic_0001>

<bundles_post_ra>
// kernel: tpu_custom_call.1
= control target key start
LH: loop header
LB: loop body
LE: loop exit
PB: predicated region body
PF: predicated region fallthrough
CT: control target
= control target key end

     0   :  { %s1740_s0 = inlined_call_operand.hbm [shape: bf16[8,512], index: 0, kind: input, shape index: {}]   ;;  %s1741_s1 = inlined_call_operand.hbm [shape: s32[64,256], index: 1, kind: input, shape index: {}]   ;;  %s1742_s2 = inlined_call_operand.hbm [shape: f32[4,256], index: 2, kind: input, shape index: {}]   ;;  %s1743_s3 = inlined_call_operand.vmem [shape: f32[1,256], index: 3, kind: input, shape index: {}]   ;;  %s1744_s4 = inlined_call_operand.hbm [shape: f32[8,256], index: 4, kind: output, shape index: {}]  }
   0x1   :  { %1750 = sst [smem:[#allocation13_spill]] %s1741_s1 }
   0x2   :  { %1751 = sst [smem:[#allocation14_spill]] %s1742_s2 }
   0x3   :  { %9 = vsyncpa [#allocation4], 0 }
   0x4   :  { %10 = vsyncpa [#allocation7], 0 }
   0x5   :  { %12 = vsyncpa [#allocation7 + $0x1], 0 }
   0x6   :  { %13 = vsyncpa [#allocation5], 0 }
   0x7   :  { %15 = vsyncpa [#allocation5 + $0x1], 0  ;;  %s1354_s15 = smov 0   ;;  %s1356_s16 = smov 0  }
   0x8   :  { %s1358_s17 = smov 0   ;;  %s1360_s18 = smov 0  }
   0x9   :  { %s1362_s19 = smov 0   ;;  %s1364_s20 = smov 0  }
   0xa LB: > { %s36_s21 = sadd.s32 1, %s1314_s19  ;;  %s77_s22 = sadd.s32 1, %s1306_s17  ;;  %s1318_s20 = sphi %s1364_s20, %s21_s20   ;;  %s1314_s19 = sphi %s1362_s19, %s1772_s19   ;;  %s1310_s18 = sphi %s1360_s18, %s1771_s18   ;;  %s1306_s17 = sphi %s1358_s17, %s1770_s17   ;;  %s1302_s16 = sphi %s1356_s16, %s1769_s16   ;;  %s1298_s15 = sphi %s1354_s15, %s1768_s15  }
   0xb   : > { %p38_p0 = scmp.ge.s32.totalorder %s36_s21, 2  ;;  %p84_p1 = scmp.ne.s32.totalorder %s1306_s17, %s1302_s16 }
   0xc   : > { %p85_p2 = scmp.eq.s32.totalorder %s1318_s20, 0  ;;  %p1085_p5 = scmp.lt.s32.totalorder %s1318_s20, 2 }
   0xd   : > { %s1774_s21 = smov (%p38_p0, %s36_s21), 0  ;;  %s212_s24 = sand.u32 1, %s1318_s20  }
   0xe   : > { %p86_p4 = por %p85_p2, %p84_p1  ;;  %s73_s23 = ssub.s32 %s1314_s19, %s1774_s21 }
   0xf   : > { %p75_p6 = scmp.eq.s32.totalorder %s73_s23, 0  ;;  %s214_s25 = sand.u32 1, %s1306_s17  }
  0x10   : > { %s924_s26 = sshll.u32 %s1314_s19, 7  ;;  %s923_s28 = sshll.u32 %s214_s25, 6 }
  0x11   : > { %s1402_s27 = scalar_select %p75_p6, %s1306_s17, %s77_s22  }
  0x12   : > { %s1752_s1 = sld [smem:[#allocation13_spill]]  ;;  %p1411_p7 = pnand %p1085_p5, %p86_p4 }
  0x13   : > { %s216_s7 = scalar_lea.vmem [#allocation6], %s923_s28  ;;  %s1417_s9 = scalar_lea.sflag [#allocation7], %s212_s24 }
  0x14   : > { %s225_s8 = sshll.u32 %s216_s7, 4  ;;  %p1146_p9 = pneg %p1411_p7  ;;  %s1415_s8 = int_to_ptr.vmem [resolvable:$true] %s225_s8 }
  0x18   : > { %s1409_s5 = scalar_lea.hbm %s1752_s1, %s924_s26  ;;  %s1149_s13 = scalar_lea.hbm %s1752_s1, 2048 }
  0x19   : > { %s1144_s10 = scalar_lea.hbm %s1409_s5, 1024  ;;  %p1150_p12 = scmp.lt.u32.totalorder %s1409_s5, %s1752_s1 }
  0x1a   : > { %p1145_p8 = scmp.ne.s32.totalorder %s1409_s5, %s1144_s10  ;;  %p1151_p13 = scmp.lt.u32.totalorder %s1149_s13, %s1144_s10 }
  0x1b   : > { %p1153_p2 = scmp.lt.u32.totalorder %s1144_s10, %s1409_s5 }
  0x1c   : > { %p1147_p10 = pnand %p1146_p9, %p1145_p8  ;;  %p1152_p0 = por %p1151_p13, %p1150_p12 }
  0x1e   : > { %p1148_p11 = pneg %p1147_p10  ;;  %p1154_p4 = por %p1153_p2, %p1152_p0 }
  0x20   : > { %p1155_p5 = pnand %p1154_p4, %p1148_p11 }
  0x22   : > { %1158 = shalt.err (!%p1155_p5)
}
  0x23   : > { %s1159_s23 = scalar_lea.vmem %s1415_s8, 1024  ;;  %s1320_s24 = smov [#allocation6]  }
  0x24   : > { %p1160_p6 = scmp.ne.s32.totalorder %s1415_s8, %s1159_s23  ;;  %s1164_s26 = sshll.u32 %s1320_s24, 4  ;;  %s1165_s26 = int_to_ptr.vmem [resolvable:$false] %s1164_s26 }
  0x25   : > { %s1166_s28 = scalar_lea.vmem %s1165_s26, 2048  ;;  %p1167_p3 = scmp.lt.s32.totalorder %s1415_s8, %s1165_s26 }
  0x26   : > { %p1162_p8 = pnand %p1160_p6, %p1146_p9  ;;  %p1168_p12 = scmp.lt.s32.totalorder %s1166_s28, %s1159_s23 }
  0x28   : > { %p1163_p10 = pneg %p1162_p8  ;;  %p1169_p13 = por %p1168_p12, %p1167_p3 }
  0x2a   : > { %p1170_p0 = pnand %p1169_p13, %p1163_p10 }
  0x2c   : > { %1173 = shalt.err (!%p1170_p0)
}
  0x2d   : > { %s1321_s29 = smov 256   ;;  %s1322_s30 = smov 128  }
  0x2e   : > { %s1323_s7 = smov 8   ;;  %s1446_s10 = sadd.s32 4294967295, %s1318_s20  }
  0x2f   : > { %1076 = dma.hbm_to_vmem [thread:$0]  (!%p1411_p7), %s1409_s5, 1024, %s1415_s8, %s1417_s9, %s1321_s29, %s1322_s30, %s1323_s7  }
  0x30   : > { %s919_s11 = sadd.s32 4294967294, %s1318_s20   ;;  %p90_p3 = scmp.ne.s32.totalorder %s1302_s16, %s1298_s15 }
  0x31   : > { %p1745_p11 = scmp.eq.s32.totalorder %s1446_s10, 0  ;;  %p170_p2 = scmp.eq.s32.totalorder %s1446_s10, 1 }
  0x32   : > { %p176_p4 = scmp.eq.s32.totalorder %s919_s11, 1  ;;  %p920_p6 = scmp.ge.s32.totalorder %s1318_s20, 1 }
  0x33   : > { %p1455_p5 = por %p1745_p11, %p90_p3  ;;  %p1463_p8 = por %p170_p2, %p84_p1 }
  0x34   : > { %p1467_p10 = por %p176_p4, %p90_p3  ;;  %p183_p12 = scmp.lt.s32.totalorder %s1318_s20, 3 }
  0x35   : > { %s1754_s12 = scalar_select %p1455_p5, 1, 0 }
  0x36   : > { %s1755_s5 = scalar_select %p1463_p8, 1, 0 }
  0x37   : > { %s1756_s8 = scalar_select %p1467_p10, 1, 0 }
  0x38   : > { %s925_s13 = sshll.u32 %s214_s25, 2  ;;  %p1474_p13 = pnand %p920_p6, %p183_p12 }
  0x39   : > { %s1324_s22 = smov [#allocation3]   ;;  %s926_s24 = sshll.u32 %s1314_s19, 6 }
  0x3a   : > { %s1757_s14 = scalar_select %p1474_p13, 1, 0 }
  0x3b   : > { %s201_s23 = sshll.u32 %s1324_s22, 4  ;;  %p1069_p1 = pneg %p1474_p13  ;;  %s1478_s23 = int_to_ptr.vmem [resolvable:$true] %s201_s23 }
  0x3c   : > { %s1758_s2 = sld [smem:[#allocation14_spill]]  ;;  %s239_s25 = scalar_lea.vmem [#allocation8], %s925_s13 }
  0x3d   : > { %s248_s30 = sshll.u32 %s239_s25, 4  ;;  %p1490_p0 = pnand %p1069_p1, %p1745_p11  ;;  %s249_s30 = int_to_ptr.vmem [resolvable:$true] %s248_s30 }
  0x3f   : > { %s1759_s7 = scalar_select %p1490_p0, 1, 0 }
  0x42   : > { %s1486_s29 = scalar_lea.hbm %s1758_s2, %s926_s24  ;;  %s1179_s26 = scalar_lea.hbm %s1758_s2, 128 }
  0x43   : > { %s1174_s11 = scalar_lea.hbm %s1486_s29, 64  ;;  %p1180_p6 = scmp.lt.u32.totalorder %s1486_s29, %s1758_s2 }
  0x44   : > { %p1175_p3 = scmp.ne.s32.totalorder %s1486_s29, %s1174_s11  ;;  %p1181_p12 = scmp.lt.u32.totalorder %s1179_s26, %s1174_s11 }
  0x45   : > { %p1183_p11 = scmp.lt.u32.totalorder %s1174_s11, %s1486_s29 }
  0x46   : > { %p1177_p2 = pnand %p1175_p3, %p1146_p9  ;;  %p1182_p1 = por %p1181_p12, %p1180_p6 }
  0x48   : > { %p1178_p4 = pneg %p1177_p2  ;;  %p1184_p10 = por %p1183_p11, %p1182_p1 }
  0x4a   : > { %p1185_p8 = pnand %p1184_p10, %p1178_p4 }
  0x4c   : > { %1188 = shalt.err (!%p1185_p8)
}
  0x4d   : > { %s1189_s13 = scalar_lea.vmem %s249_s30, 64  ;;  %s1325_s25 = smov [#allocation8]  }
  0x4e   : > { %p1190_p5 = scmp.ne.s32.totalorder %s249_s30, %s1189_s13  ;;  %s1194_s22 = sshll.u32 %s1325_s25, 4  ;;  %s1195_s22 = int_to_ptr.vmem [resolvable:$false] %s1194_s22 }
  0x4f   : > { %s1196_s24 = scalar_lea.vmem %s1195_s22, 128  ;;  %p1197_p13 = scmp.lt.s32.totalorder %s249_s30, %s1195_s22 }
  0x50   : > { %p1192_p3 = pnand %p1190_p5, %p1146_p9  ;;  %p1198_p0 = scmp.lt.s32.totalorder %s1196_s24, %s1189_s13 }
  0x52   : > { %p1193_p2 = pneg %p1192_p3  ;;  %p1199_p6 = por %p1198_p0, %p1197_p13 }
  0x54   : > { %p1200_p12 = pnand %p1199_p6, %p1193_p2 }
  0x56   : > { %1203 = shalt.err (!%p1200_p12)
}
  0x57   : > { %1079 = dma.hbm_to_vmem [thread:$0]  (!%p1411_p7), %s1486_s29, 64, %s249_s30, %s1417_s9  }
  0x58   : > { %s1204_s26 = scalar_lea.hbm %s1740_s0, 256  ;;  %p1760_p11 = scmp.ne.s32.totalorder %s1759_s7, 0 }
  0x59   : > { %p1205_p9 = scmp.ne.s32.totalorder %s1740_s0, %s1204_s26  ;;  %p1211_p13 = scmp.lt.u32.totalorder %s1204_s26, %s1740_s0 }
  0x5a   : > { %p1206_p5 = pneg %p1760_p11 }
  0x5c   : > { %p1207_p8 = pnand %p1206_p5, %p1205_p9 }
  0x5e   : > { %p1208_p10 = pneg %p1207_p8 }
  0x60   : > { %p1213_p0 = pnand %p1211_p13, %p1208_p10 }
  0x62   : > { %1216 = shalt.err (!%p1213_p0)
}
  0x63   : > { %s1217_s6 = scalar_lea.vmem %s1478_s23, 256  ;;  %p1225_p3 = scmp.lt.s32.totalorder %s1478_s23, %s1478_s23 }
  0x64   : > { %p1218_p7 = scmp.ne.s32.totalorder %s1478_s23, %s1217_s6  ;;  %p1226_p2 = scmp.lt.s32.totalorder %s1217_s6, %s1217_s6 }
  0x66   : > { %p1220_p4 = pnand %p1218_p7, %p1206_p5  ;;  %p1227_p6 = por %p1226_p2, %p1225_p3 }
  0x68   : > { %p1221_p1 = pneg %p1220_p4 }
  0x6a   : > { %p1228_p12 = pnand %p1227_p6, %p1221_p1 }
  0x6c   : > { %1231 = shalt.err (!%p1228_p12)
}
  0x6d   : > { %1072 = dma.hbm_to_vmem [thread:$0]  (!%p1760_p11), %s1740_s0, 256, %s1478_s23, [#allocation4]  }
  0x6e   : > { %p1761_p9 = scmp.ne.s32.totalorder %s1757_s14, 0 }
  0x6f   : > { %p1762_p8 = scmp.eq.s32.totalorder (!%p1761_p9), %s1446_s10, 0 }
  0x70   : > { %263 = sbr.rel (%p1761_p9) target bundleno = 431 (0x1af), region = 36 }
  0x77   : > { %1285 = dma.done.wait (%p1762_p8), [#allocation4], 256   ;;  %p1763_p5 = pmov %p1762_p8 }
  0x78   : > { %s269_s29 = sand.u32 1, %s1446_s10   ;;  %s1543_s30 = sand.u32 1, %s1302_s16  }
  0x79   : > { %1287 = vsyncadd (%p1763_p5), [#allocation4], 4294967040  ;;  %s929_s7 = sshll.u32 %s1543_s30, 6  ;;  %s270_s22 = scalar_lea.sflag [#allocation7], %s269_s29 }
  0x7a   : > { %s1546_s24 = scalar_lea.vmem [#allocation6], %s929_s7  ;;  %p1764_p11 = scmp.ne.s32.totalorder %s1754_s12, 0 }
  0x7c   : > { %1289 = dma.done.wait (%p1764_p11), %s270_s22, 1088  }
  0x7d   : > { %1291 = vsyncadd (%p1764_p11), %s270_s22, 4294966208  ;;  %v1326_v0 = vmov 0.0   ;;  %vm1327_vm0 = vmmov 0   ;;  %v1559_v1 = vld [vmem:[%s1546_s24] sm:$0xff]  ;;  %v1562_v2 = vld [vmem:[%s1546_s24 + $0x8] sm:$0xff]  ;;  %s930_s10 = sshll.u32 %s1543_s30, 2 }
  0x7e   : > { %979 = vmatprep.subr.bf16.mxu0 %v1326_v0  ;;  %999 = vmatprep.subr.bf16.mxu1 %v1326_v0  ;;  %v1565_v3 = vld [vmem:[%s1546_s24 + $0x10] sm:$0xff]  ;;  %v330_v4 = vshll.u32 %v1559_v1, 28  ;;  %v331_v5 = vshll.u32 %v1562_v2, 28  ;;  %v1570_v6 = vld [vmem:[%s1546_s24 + $0x18] sm:$0xff]  ;;  %v337_v8 = vshll.u32 %v1559_v1, 24  ;;  %v338_v10 = vshll.u32 %v1562_v2, 24 }
  0x7f   : > { %995 = vmatprep.mubr.msk.bf16.mxu0 %vm1327_vm0, %v1326_v0  ;;  %1015 = vmatprep.mubr.msk.bf16.mxu1 %vm1327_vm0, %v1326_v0  ;;  %v435_v7 = vshll.u32 %v1565_v3, 28  ;;  %v436_v9 = vshll.u32 %v1570_v6, 28  ;;  %v442_v11 = vshll.u32 %v1565_v3, 24  ;;  %v443_v12 = vshll.u32 %v1570_v6, 24  ;;  %s282_s12 = scalar_lea.vmem [#allocation8], %s930_s10  ;;  %p317_p10 = scmp.lt.s32.totalorder %s1310_s18, 1 }
  0x80   : > { %v332_v13 = vshra.s32 %v330_v4, 28  ;;  %v333_v14 = vshra.s32 %v331_v5, 28  ;;  %v339_v16 = vshra.s32 %v337_v8, 28  ;;  %v340_v18 = vshra.s32 %v338_v10, 28  ;;  %s931_s23 = sshll.u32 %s1543_s30, 3  ;;  %s940_s28 = sshll.u32 %s1310_s18, 7 }
  0x81   : > { %v437_v15 = vshra.s32 %v435_v7, 28  ;;  %v438_v17 = vshra.s32 %v436_v9, 28  ;;  %v444_v19 = vshra.s32 %v442_v11, 28  ;;  %v445_v20 = vshra.s32 %v443_v12, 28  ;;  %s318_s14 = scalar_select %p317_p10, %s1310_s18, 1 }
  0x82   : > { %v334_v21 = vcvt.s32.f32 %v332_v13  ;;  %v335_v22 = vcvt.s32.f32 %v333_v14  ;;  %v341_v24 = vcvt.s32.f32 %v339_v16  ;;  %v342_v26 = vcvt.s32.f32 %v340_v18  ;;  %s314_s13 = scalar_lea.vmem [#allocation9], %s931_s23  ;;  %s1691_s9 = scalar_lea.hbm %s1744_s4, %s940_s28 }
  0x83   : > { %v439_v23 = vcvt.s32.f32 %v437_v15  ;;  %v440_v25 = vcvt.s32.f32 %v438_v17  ;;  %v446_v27 = vcvt.s32.f32 %v444_v19  ;;  %v447_v28 = vcvt.s32.f32 %v445_v20  ;;  %s319_s26 = scalar_lea.vmem %s1743_s3, %s318_s14  ;;  %s785_s25 = sshll.u32 %s314_s13, 4  ;;  %s1693_s25 = int_to_ptr.vmem [resolvable:$true] %s785_s25 }
  0x84   : > { %v336_v29 = vpack.c.bf16 %v335_v22, %v334_v21  ;;  %v344_v30 = vshll.u32 %v1559_v1, 20  ;;  %v345_v31 = vshll.u32 %v1562_v2, 20  ;;  %v449_v32 = vshll.u32 %v1565_v3, 20  ;;  %s770_s29 = scalar_lea.sflag [#allocation5], %s1543_s30  ;;  %s1232_s7 = scalar_lea.vmem %s1693_s25, 128 }
  0x85   : > { %v441_v33 = vpack.c.bf16 %v440_v25, %v439_v23  ;;  %v343_v34 = vpack.c.bf16 %v342_v26, %v341_v24  ;;  %v448_v35 = vpack.c.bf16 %v447_v28, %v446_v27  ;;  %v450_v36 = vshll.u32 %v1570_v6, 20  ;;  %p1233_p13 = scmp.ne.s32.totalorder %s1693_s25, %s1232_s7  ;;  %p1765_p0 = scmp.ne.s32.totalorder %s1755_s5, 0 }
  0x86   : > { %980 = vmatpush3.bf16.msra.mxu0 %v336_v29  ;;  %v346_v37 = vshra.s32 %v344_v30, 28  ;;  %v347_v38 = vshra.s32 %v345_v31, 28  ;;  %v451_v39 = vshra.s32 %v449_v32, 28  ;;  %v351_v40 = vshll.u32 %v1559_v1, 16  ;;  %s1328_s18 = smov [#allocation9]  }
  0x87   : > { %1000 = vmatpush3.bf16.msra.mxu1 %v441_v33  ;;  %981 = vmatprep.subr.bf16.mxu0 %v1326_v0  ;;  %v452_v41 = vshra.s32 %v450_v36, 28  ;;  %v352_v42 = vshll.u32 %v1562_v2, 16  ;;  %v456_v43 = vshll.u32 %v1565_v3, 16  ;;  %v457_v44 = vshll.u32 %v1570_v6, 16  ;;  %p1234_p7 = pnand %p1233_p13, %p1765_p0  ;;  %s1236_s22 = sshll.u32 %s1328_s18, 4  ;;  %s1237_s22 = int_to_ptr.vmem [resolvable:$false] %s1236_s22 }
  0x88   : > { %1001 = vmatprep.subr.bf16.mxu1 %v1326_v0  ;;  %v348_v45 = vcvt.s32.f32 %v346_v37  ;;  %v349_v46 = vcvt.s32.f32 %v347_v38  ;;  %v453_v47 = vcvt.s32.f32 %v451_v39  ;;  %v353_v48 = vshra.s32 %v351_v40, 28  ;;  %v1610_v40 = vld [vmem:[%s1546_s24 + $0x20] sm:$0xff]  ;;  %p1239_p1 = scmp.lt.s32.totalorder %s1693_s25, %s1237_s22 }
  0x89   : > { %v454_v49 = vcvt.s32.f32 %v452_v41  ;;  %v354_v50 = vshra.s32 %v352_v42, 28  ;;  %v458_v51 = vshra.s32 %v456_v43, 28  ;;  %v459_v52 = vshra.s32 %v457_v44, 28  ;;  %v1613_v41 = vld [vmem:[%s1546_s24 + $0x28] sm:$0xff]  ;;  %p1235_p4 = pneg %p1234_p7 }
  0x8a   : > { %982 = vmatpush3.bf16.msra.mxu0 %v343_v34  ;;  %v350_v53 = vpack.c.bf16 %v349_v46, %v348_v45  ;;  %v355_v54 = vcvt.s32.f32 %v353_v48  ;;  %v358_v55 = vshll.u32 %v1559_v1, 12  ;;  %v359_v56 = vshll.u32 %v1562_v2, 12  ;;  %v1617_v46 = vld [vmem:[%s1546_s24 + $0x30] sm:$0xff] }
  0x8b   : > { %1002 = vmatpush3.bf16.msra.mxu1 %v448_v35  ;;  %983 = vmatprep.subr.bf16.mxu0 %v1326_v0  ;;  %v455_v57 = vpack.c.bf16 %v454_v49, %v453_v47  ;;  %v356_v58 = vcvt.s32.f32 %v354_v50  ;;  %v460_v59 = vcvt.s32.f32 %v458_v51  ;;  %v461_v60 = vcvt.s32.f32 %v459_v52  ;;  %v1620_v47 = vld [vmem:[%s1546_s24 + $0x38] sm:$0xff]  ;;  %s1238_s24 = scalar_lea.vmem %s1237_s22, 256 }
  0x8c   : > { %1003 = vmatprep.subr.bf16.mxu1 %v1326_v0  ;;  %v360_v61 = vshra.s32 %v358_v55, 28  ;;  %v361_v62 = vshra.s32 %v359_v56, 28  ;;  %v463_v63 = vshll.u32 %v1565_v3, 12  ;;  %v464_v4 = vshll.u32 %v1570_v6, 12  ;;  %p1240_p3 = scmp.lt.s32.totalorder %s1238_s24, %s1232_s7 }
  0x8d   : > { %v357_v5 = vpack.c.bf16 %v356_v58, %v355_v54  ;;  %v462_v7 = vpack.c.bf16 %v461_v60, %v460_v59  ;;  %v365_v8 = vshll.u32 %v1559_v1, 8  ;;  %v366_v9 = vshll.u32 %v1562_v2, 8 }
  0x8e   : > { %984 = vmatpush3.bf16.msra.mxu0 %v350_v53  ;;  %v362_v10 = vcvt.s32.f32 %v360_v61  ;;  %v363_v11 = vcvt.s32.f32 %v361_v62  ;;  %v465_v12 = vshra.s32 %v463_v63, 28  ;;  %v466_v13 = vshra.s32 %v464_v4, 28  ;;  %p1241_p2 = por %p1240_p3, %p1239_p1 }
  0x8f   : > { %1004 = vmatpush3.bf16.msra.mxu1 %v455_v57  ;;  %985 = vmatprep.subr.bf16.mxu0 %v1326_v0  ;;  %v367_v14 = vshra.s32 %v365_v8, 28  ;;  %v368_v15 = vshra.s32 %v366_v9, 28  ;;  %v470_v16 = vshll.u32 %v1565_v3, 8  ;;  %v471_v17 = vshll.u32 %v1570_v6, 8 }
  0x90   : > { %1005 = vmatprep.subr.bf16.mxu1 %v1326_v0  ;;  %v467_v18 = vcvt.s32.f32 %v465_v12  ;;  %v468_v19 = vcvt.s32.f32 %v466_v13  ;;  %v372_v20 = vshll.u32 %v1559_v1, 4  ;;  %v364_v21 = vpack.c.bf16 %v363_v11, %v362_v10  ;;  %p1242_p6 = pnand %p1241_p2, %p1235_p4 }
  0x91   : > { %v369_v22 = vcvt.s32.f32 %v367_v14  ;;  %v472_v23 = vshra.s32 %v470_v16, 28  ;;  %v473_v24 = vshra.s32 %v471_v17, 28  ;;  %v370_v25 = vcvt.s32.f32 %v368_v15  ;;  %v326_v14 = vld [vmem:[#allocation3] sm:$0xff] }
  0x92   : > { %986 = vmatpush3.bf16.msra.mxu0 %v357_v5  ;;  %v373_v26 = vshll.u32 %v1562_v2, 4  ;;  %v374_v27 = vshra.s32 %v372_v20, 28  ;;  %v477_v28 = vshll.u32 %v1565_v3, 4  ;;  %v469_v29 = vpack.c.bf16 %v468_v19, %v467_v18 }
  0x93   : > { %1006 = vmatpush3.bf16.msra.mxu1 %v462_v7  ;;  %987 = vmatprep.subr.bf16.mxu0 %v1326_v0  ;;  %v474_v30 = vcvt.s32.f32 %v472_v23  ;;  %v475_v31 = vcvt.s32.f32 %v473_v24  ;;  %v478_v32 = vshll.u32 %v1570_v6, 4  ;;  %v379_v35 = vshra.s32 %v1559_v1, 28 }
  0x94   : > { %1007 = vmatprep.subr.bf16.mxu1 %v1326_v0  ;;  %v375_v33 = vshra.s32 %v373_v26, 28  ;;  %v479_v34 = vshra.s32 %v477_v28, 28  ;;  %v376_v36 = vcvt.s32.f32 %v374_v27  ;;  %v380_v38 = vshra.s32 %v1562_v2, 28 }
  0x95   : > { %v480_v37 = vshra.s32 %v478_v32, 28  ;;  %v484_v39 = vshra.s32 %v1565_v3, 28  ;;  %v371_v42 = vpack.c.bf16 %v370_v25, %v369_v22  ;;  %v485_v45 = vshra.s32 %v1570_v6, 28 }
  0x96   : > { %988 = vmatpush3.bf16.msra.mxu0 %v364_v21  ;;  %v377_v43 = vcvt.s32.f32 %v375_v33  ;;  %v481_v44 = vcvt.s32.f32 %v479_v34  ;;  %v476_v1 = vpack.c.bf16 %v475_v31, %v474_v30  ;;  %v381_v3 = vcvt.s32.f32 %v379_v35 }
  0x97   : > { %1008 = vmatpush3.bf16.msra.mxu1 %v469_v29  ;;  %989 = vmatprep.subr.bf16.mxu0 %v1326_v0  ;;  %v482_v2 = vcvt.s32.f32 %v480_v37  ;;  %v382_v48 = vcvt.s32.f32 %v380_v38  ;;  %v486_v49 = vcvt.s32.f32 %v484_v39  ;;  %v544_v50 = vshll.u32 %v1610_v40, 28 }
  0x98   : > { %1009 = vmatprep.subr.bf16.mxu1 %v1326_v0  ;;  %v545_v51 = vshll.u32 %v1613_v41, 28  ;;  %v378_v52 = vpack.c.bf16 %v377_v43, %v376_v36  ;;  %v487_v6 = vcvt.s32.f32 %v485_v45  ;;  %v649_v53 = vshll.u32 %v1617_v46, 28 }
  0x99   : > { %v650_v54 = vshll.u32 %v1620_v47, 28  ;;  %v483_v55 = vpack.c.bf16 %v482_v2, %v481_v44  ;;  %v546_v56 = vshra.s32 %v544_v50, 28  ;;  %v551_v58 = vshll.u32 %v1610_v40, 24 }
  0x9a   : > { %990 = vmatpush3.bf16.msra.mxu0 %v371_v42  ;;  %v547_v57 = vshra.s32 %v545_v51, 28  ;;  %v651_v59 = vshra.s32 %v649_v53, 28  ;;  %v552_v61 = vshll.u32 %v1613_v41, 24  ;;  %v656_v62 = vshll.u32 %v1617_v46, 24 }
  0x9b   : > { %1010 = vmatpush3.bf16.msra.mxu1 %v476_v1  ;;  %991 = vmatprep.subr.bf16.mxu0 %v1326_v0  ;;  %v652_v60 = vshra.s32 %v650_v54, 28  ;;  %v553_v63 = vshra.s32 %v551_v58, 28  ;;  %v657_v4 = vshll.u32 %v1620_v47, 24  ;;  %v383_v5 = vpack.c.bf16 %v382_v48, %v381_v3 }
  0x9c   : > { %1011 = vmatprep.subr.bf16.mxu1 %v1326_v0  ;;  %v554_v7 = vshra.s32 %v552_v61, 28  ;;  %v658_v8 = vshra.s32 %v656_v62, 28  ;;  %v548_v9 = vcvt.s32.f32 %v546_v56  ;;  %v549_v10 = vcvt.s32.f32 %v547_v57 }
  0x9d   : > { %v659_v11 = vshra.s32 %v657_v4, 28  ;;  %v558_v12 = vshll.u32 %v1610_v40, 20  ;;  %v488_v13 = vpack.c.bf16 %v487_v6, %v486_v49  ;;  %v653_v15 = vcvt.s32.f32 %v651_v59 }
  0x9e   : > { %992 = vmatpush3.bf16.msra.mxu0 %v378_v52  ;;  %v654_v16 = vcvt.s32.f32 %v652_v60  ;;  %v559_v17 = vshll.u32 %v1613_v41, 20  ;;  %v555_v18 = vcvt.s32.f32 %v553_v63  ;;  %v556_v19 = vcvt.s32.f32 %v554_v7 }
  0x9f   : > { %1012 = vmatpush3.bf16.msra.mxu1 %v483_v55  ;;  %993 = vmatprep.subr.bf16.mxu0 %v1326_v0  ;;  %v663_v20 = vshll.u32 %v1617_v46, 20  ;;  %v664_v21 = vshll.u32 %v1620_v47, 20  ;;  %v660_v22 = vcvt.s32.f32 %v658_v8  ;;  %v661_v23 = vcvt.s32.f32 %v659_v11 }
  0xa0   : > { %1013 = vmatprep.subr.bf16.mxu1 %v1326_v0  ;;  %v565_v24 = vshll.u32 %v1610_v40, 16  ;;  %v566_v25 = vshll.u32 %v1613_v41, 16  ;;  %v933_v26 = vcombine.high %v326_v14, %v326_v14  ;;  %v550_v27 = vpack.c.bf16 %v549_v10, %v548_v9 }
  0xa1   : > { %v560_v28 = vshra.s32 %v558_v12, 28  ;;  %v561_v29 = vshra.s32 %v559_v17, 28  ;;  %v655_v30 = vpack.c.bf16 %v654_v16, %v653_v15  ;;  %v665_v31 = vshra.s32 %v663_v20, 28 }
  0xa2   : > { %994 = vmatpush3.bf16.msra.mxu0 %v383_v5  ;;  %v666_v32 = vshra.s32 %v664_v21, 28  ;;  %v670_v33 = vshll.u32 %v1617_v46, 16  ;;  %v567_v34 = vshra.s32 %v565_v24, 28  ;;  %v568_v35 = vshra.s32 %v566_v25, 28 }
  0xa3   : > { %1014 = vmatpush3.bf16.msra.mxu1 %v488_v13  ;;  %1019 = vmatprep.subr.bf16.mxu0 %v1326_v0  ;;  %v671_v36 = vshll.u32 %v1620_v47, 16  ;;  %v572_v37 = vshll.u32 %v1610_v40, 12  ;;  %v557_v38 = vpack.c.bf16 %v556_v19, %v555_v18  ;;  %v662_v39 = vpack.c.bf16 %v661_v23, %v660_v22 }
  0xa4   : > { %1039 = vmatprep.subr.bf16.mxu1 %v1326_v0  ;;  %v672_v42 = vshra.s32 %v670_v33, 28  ;;  %v562_v43 = vcvt.s32.f32 %v560_v28  ;;  %v563_v44 = vcvt.s32.f32 %v561_v29  ;;  %v573_v1 = vshll.u32 %v1613_v41, 12 }
  0xa5   : > { %996 = vmatmul.mubr.bf16.vlgmr.msra.gmra.mrb[0].mxu0 %v326_v14  ;;  %v673_v45 = vshra.s32 %v671_v36, 28  ;;  %v667_v2 = vcvt.s32.f32 %v665_v31  ;;  %v668_v3 = vcvt.s32.f32 %v666_v32  ;;  %v677_v48 = vshll.u32 %v1617_v46, 12 }
  0xa6   : > { %1016 = vmatmul.mubr.bf16.vlgmr.msra.gmra.mrb[0].mxu1 %v933_v26  ;;  %1020 = vmatpush3.bf16.msra.mxu0 %v550_v27  ;;  %v678_v49 = vshll.u32 %v1620_v47, 12  ;;  %v569_v50 = vcvt.s32.f32 %v567_v34  ;;  %v570_v51 = vcvt.s32.f32 %v568_v35  ;;  %v674_v52 = vcvt.s32.f32 %v672_v42 }
  0xa7   : > { %1040 = vmatpush3.bf16.msra.mxu1 %v655_v30  ;;  %1021 = vmatprep.subr.bf16.mxu0 %v1326_v0  ;;  %v574_v6 = vshra.s32 %v572_v37, 28  ;;  %v675_v53 = vcvt.s32.f32 %v673_v45  ;;  %v575_v54 = vshra.s32 %v573_v1, 28  ;;  %v579_v55 = vshll.u32 %v1610_v40, 8  ;;  %v932_v1 = vld [vmem:[%s282_s12] ss:$0 sm:$0xff] }
  0xa8   : > { %1041 = vmatprep.subr.bf16.mxu1 %v1326_v0  ;;  %1035 = vmatprep.mubr.msk.bf16.mxu0 %vm1327_vm0, %v1326_v0  ;;  %v580_v56 = vshll.u32 %v1613_v41, 8  ;;  %v564_v57 = vpack.c.bf16 %v563_v44, %v562_v43  ;;  %v684_v58 = vshll.u32 %v1617_v46, 8  ;;  %v685_v59 = vshll.u32 %v1620_v47, 8 }
  0xa9   : > { %1055 = vmatprep.mubr.msk.bf16.mxu1 %vm1327_vm0, %v1326_v0  ;;  %v669_v60 = vpack.c.bf16 %v668_v3, %v667_v2  ;;  %v679_v61 = vshra.s32 %v677_v48, 28  ;;  %v680_v62 = vshra.s32 %v678_v49, 28  ;;  %v571_v63 = vpack.c.bf16 %v570_v51, %v569_v50  ;;  %v934_v2 = vld [vmem:[%s282_s12 + $0x1] ss:$0 sm:$0xff] }
  0xaa   : > { %1022 = vmatpush3.bf16.msra.mxu0 %v557_v38  ;;  %v576_v4 = vcvt.s32.f32 %v574_v6  ;;  %v676_v5 = vpack.c.bf16 %v675_v53, %v674_v52  ;;  %v577_v7 = vcvt.s32.f32 %v575_v54  ;;  %v581_v8 = vshra.s32 %v579_v55, 28 }
  0xab   : > { %1042 = vmatpush3.bf16.msra.mxu1 %v662_v39  ;;  %1023 = vmatprep.subr.bf16.mxu0 %v1326_v0  ;;  %v582_v9 = vshra.s32 %v580_v56, 28  ;;  %v686_v10 = vshra.s32 %v684_v58, 28  ;;  %v687_v11 = vshra.s32 %v685_v59, 28  ;;  %v586_v12 = vshll.u32 %v1610_v40, 4  ;;  %v935_v56 = vld [vmem:[%s282_s12 + $0x2] ss:$0 sm:$0xff] }
  0xac   : > { %1043 = vmatprep.subr.bf16.mxu1 %v1326_v0  ;;  %v587_v13 = vshll.u32 %v1613_v41, 4  ;;  %v681_v14 = vcvt.s32.f32 %v679_v61  ;;  %v682_v15 = vcvt.s32.f32 %v680_v62  ;;  %v691_v16 = vshll.u32 %v1617_v46, 4 }
  0xad   : > { %v692_v17 = vshll.u32 %v1620_v47, 4  ;;  %v578_v18 = vpack.c.bf16 %v577_v7, %v576_v4  ;;  %v583_v19 = vcvt.s32.f32 %v581_v8  ;;  %v584_v20 = vcvt.s32.f32 %v582_v9  ;;  %v938_v9 = vld [vmem:[%s319_s26] ss:$0 sm:$0xff] }
  0xae   : > { %1024 = vmatpush3.bf16.msra.mxu0 %v564_v57  ;;  %v688_v21 = vcvt.s32.f32 %v686_v10  ;;  %v689_v22 = vcvt.s32.f32 %v687_v11  ;;  %v588_v23 = vshra.s32 %v586_v12, 28  ;;  %v589_v24 = vshra.s32 %v587_v13, 28  ;;  %v937_v57 = vld [vmem:[%s282_s12 + $0x3] ss:$0 sm:$0xff] }
  0xaf   : > { %1044 = vmatpush3.bf16.msra.mxu1 %v669_v60  ;;  %1025 = vmatprep.subr.bf16.mxu0 %v1326_v0  ;;  %v683_v25 = vpack.c.bf16 %v682_v15, %v681_v14  ;;  %v693_v26 = vshra.s32 %v691_v16, 28  ;;  %v694_v27 = vshra.s32 %v692_v17, 28  ;;  %v585_v28 = vpack.c.bf16 %v584_v20, %v583_v19 }
  0xb0   : > { %1045 = vmatprep.subr.bf16.mxu1 %v1326_v0  ;;  %v593_v29 = vshra.s32 %v1610_v40, 28  ;;  %v690_v30 = vpack.c.bf16 %v689_v22, %v688_v21  ;;  %v590_v31 = vcvt.s32.f32 %v588_v23  ;;  %v591_v32 = vcvt.s32.f32 %v589_v24 }
  0xb1   : > { %v594_v33 = vshra.s32 %v1613_v41, 28  ;;  %v695_v34 = vcvt.s32.f32 %v693_v26  ;;  %v696_v35 = vcvt.s32.f32 %v694_v27  ;;  %v698_v36 = vshra.s32 %v1617_v46, 28 }
  0xb2   : > { %1026 = vmatpush3.bf16.msra.mxu0 %v571_v63  ;;  %v699_v37 = vshra.s32 %v1620_v47, 28  ;;  %v592_v38 = vpack.c.bf16 %v591_v32, %v590_v31  ;;  %v595_v40 = vcvt.s32.f32 %v593_v29  ;;  %v327_v47 = vld [vmem:[#allocation3 + $0x8] sm:$0xff] }
  0xb3   : > { %1046 = vmatpush3.bf16.msra.mxu1 %v676_v5  ;;  %1027 = vmatprep.subr.bf16.mxu0 %v1326_v0  ;;  %v596_v39 = vcvt.s32.f32 %v594_v33  ;;  %v697_v42 = vpack.c.bf16 %v696_v35, %v695_v34  ;;  %v700_v41 = vcvt.s32.f32 %v698_v36  ;;  %v936_v45 = vcombine.high %v327_v47, %v327_v47 }
  0xb4   : > { %1047 = vmatprep.subr.bf16.mxu1 %v1326_v0  ;;  %v701_v43 = vcvt.s32.f32 %v699_v37 }
  0xb5   : > { %v597_v44 = vpack.c.bf16 %v596_v39, %v595_v40 }
  0xb6   : > { %1028 = vmatpush3.bf16.msra.mxu0 %v578_v18  ;;  %v702_v46 = vpack.c.bf16 %v701_v43, %v700_v41 }
  0xb7   : > { %1048 = vmatpush3.bf16.msra.mxu1 %v683_v25  ;;  %1029 = vmatprep.subr.bf16.mxu0 %v1326_v0 }
  0xb8   : > { %1049 = vmatprep.subr.bf16.mxu1 %v1326_v0 }
  0xba   : > { %1030 = vmatpush3.bf16.msra.mxu0 %v585_v28 }
  0xbb   : > { %1050 = vmatpush3.bf16.msra.mxu1 %v690_v30  ;;  %1031 = vmatprep.subr.bf16.mxu0 %v1326_v0 }
  0xbc   : > { %1051 = vmatprep.subr.bf16.mxu1 %v1326_v0 }
  0xbe   : > { %1032 = vmatpush3.bf16.msra.mxu0 %v592_v38 }
  0xbf   : > { %1052 = vmatpush3.bf16.msra.mxu1 %v697_v42  ;;  %1033 = vmatprep.subr.bf16.mxu0 %v1326_v0 }
  0xc0   : > { %1053 = vmatprep.subr.bf16.mxu1 %v1326_v0 }
  0xc2   : > { %1034 = vmatpush3.bf16.msra.mxu0 %v597_v44 }
  0xc3   : > { %1054 = vmatpush3.bf16.msra.mxu1 %v702_v46 }
  0xc5   : > { %1036 = vmatmul.mubr.bf16.vlgmr.msra.gmra.mrb[4].mxu0 %v327_v47 }
  0xc6   : > { %1056 = vmatmul.mubr.bf16.vlgmr.msra.gmra.mrb[4].mxu1 %v936_v45 }
 0x178   : > { %v418_v3 = vpop.f32.mrb[0].mxu0 }
 0x179   : > { %v430_v48 = vmul.f32 %v932_v1, %v418_v3  ;;  %v527_v49 = vpop.f32.mrb[0].mxu1  ;;  %v997_v50 = vpop.f32.mrb[1].mxu0 }
 0x17a   : > { %v539_v51 = vmul.f32 %v934_v2, %v527_v49  ;;  %v1017_v52 = vpop.f32.mrb[1].mxu1  ;;  %v421_v6 = vpop.f32.mrb[2].mxu0 }
 0x17b   : > { %v530_v0 = vpop.f32.mrb[2].mxu1  ;;  %v998_v53 = vpop.f32.mrb[3].mxu0 }
 0x17c   : > { %v540_v54 = vadd.f32 %v539_v51, %v430_v48  ;;  %v1018_v55 = vpop.f32.mrb[3].mxu1 }
 0x198   : > { %v632_v58 = vpop.f32.mrb[4].mxu0 }
 0x199   : > { %v644_v59 = vmul.f32 %v935_v56, %v632_v58  ;;  %v741_v60 = vpop.f32.mrb[4].mxu1  ;;  %v1037_v61 = vpop.f32.mrb[5].mxu0 }
 0x19a   : > { %v753_v62 = vmul.f32 %v937_v57, %v741_v60  ;;  %v1057_v63 = vpop.f32.mrb[5].mxu1  ;;  %v635_v4 = vpop.f32.mrb[6].mxu0 }
 0x19b   : > { %v645_v5 = vadd.f32 %v644_v59, %v540_v54  ;;  %v744_v7 = vpop.f32.mrb[6].mxu1  ;;  %v1038_v8 = vpop.f32.mrb[7].mxu0 }
 0x19c   : > { %v1058_v10 = vpop.f32.mrb[7].mxu1 }
 0x19d   : > { %v754_v11 = vadd.f32 %v753_v62, %v645_v5 }
 0x19f   : > { %v767_v12 = vadd.f32 %v938_v9, %v754_v11 }
 0x1a1   : > { %768 = vst [vmem:[%s314_s13] sm:$0xff] %v767_v12 }
 0x1a2   : > { %1245 = shalt.err (!%p1242_p6)
}
 0x1a3   : > { %s1246_s30 = scalar_lea.hbm %s1691_s9, 128  ;;  %s1250_s14 = scalar_lea.hbm %s1744_s4, 256 }
 0x1a4   : > { %p1247_p12 = scmp.ne.s32.totalorder %s1691_s9, %s1246_s30  ;;  %p1251_p5 = scmp.lt.u32.totalorder %s1691_s9, %s1744_s4 }
 0x1a5   : > { %p1252_p11 = scmp.lt.u32.totalorder %s1250_s14, %s1246_s30  ;;  %p1254_p13 = scmp.lt.u32.totalorder %s1246_s30, %s1691_s9 }
 0x1a6   : > { %p1248_p9 = pnand %p1247_p12, %p1765_p0 }
 0x1a7   : > { %p1253_p10 = por %p1252_p11, %p1251_p5 }
 0x1a8   : > { %p1249_p8 = pneg %p1248_p9 }
 0x1a9   : > { %p1255_p7 = por %p1254_p13, %p1253_p10 }
 0x1ab   : > { %p1256_p4 = pnand %p1255_p7, %p1249_p8 }
 0x1ad   : > { %1259 = shalt.err (!%p1256_p4)
}
 0x1ae   : > { %1067 = dma.vmem_to_hbm [thread:$0]  (%p1765_p0), %s1693_s25, 128, %s1691_s9, %s770_s29  }
 0x1af PF: > { %s797_s11 = sand.u32 1, %s1298_s15   ;;  %p1766_p1 = scmp.ne.s32.totalorder %s1756_s8, 0 }
 0x1b0   : > { %p1767_p3 = scmp.ge.s32.totalorder %s1318_s20, 2  ;;  %s798_s26 = scalar_lea.sflag [#allocation5], %s797_s11 }
 0x1b2   : > { %p1081_p2 = pnand %p1767_p3, %p1766_p1 }
 0x1b4   : > { %1293 = dma.done.wait (!%p1081_p2), %s798_s26, 128  }
 0x1b5   : > { %1295 = vsyncadd (!%p1081_p2), %s798_s26, 4294967168  ;;  %s21_s20 = sadd.s32 1, %s1318_s20   ;;  %s1768_s15 = smov %s1302_s16 }
 0x1b6   : > { %p18_p6 = scmp.ge.s32.totalorder %s21_s20, 4   ;;  %s1769_s16 = smov %s1306_s17 }
 0x1b7   : > { %s1770_s17 = smov %s1402_s27  ;;  %s1771_s18 = smov %s1314_s19 }
 0x1b8   : > { %s1772_s19 = smov %s1774_s21  ;;  %20 = sbr.rel (!%p18_p6) target bundleno = 10 (0xa), region = 109 }
 0x1bf   :  { %803 = vsyncpa [#allocation4], 1 }
 0x1c0   :  { %805 = vsyncpa [#allocation4 + $0x1], 1 }
 0x1c1   :  { %806 = vsyncpa [#allocation7], 1 }
 0x1c2   :  { %808 = vsyncpa [#allocation7 + $0x1], 1 }
 0x1c3   :  { %809 = vsyncpa [#allocation5], 1 }
 0x1c4   :  { %811 = vsyncpa [#allocation5 + $0x1], 1 }

</bundles_post_ra>
